<compile_context>
chip_gen: v5e
topology: v5e:2x2
jax: 0.10.0
libtpu: 0.0.40
codegen_flags: <defaults>
</compile_context>

<pallas_src>
import functools

import jax
import jax.numpy as jnp
from jax import lax
from jax.experimental import pallas as pl
from jax.experimental.pallas import tpu as pltpu

_LANE = 128      # TPU lane width (last-dim vreg granularity)
_SUBLANE = 8     # sublane granularity (second-to-last dim)
_TARGET_REAL_BYTES = 8 * 1024 * 1024   # aim for ~4-8 MiB of real HBM data per grid step


def _round_up(v, m):
    return ((v + m - 1) // m) * m


def _gap_kernel_single(x_ref, o_ref, *, inv_hw):
    """Full H*W per step.  x_ref: (row_tile, hw); o_ref: (1, row_tile)."""
    x = x_ref[...].astype(jnp.float32)
    s = jnp.sum(x[None], axis=-1)                     # (1, row_tile)
    o_ref[...] = (s * inv_hw).astype(o_ref.dtype)


def _gap_kernel_tiled(x_ref, o_ref, acc_ref, *, inv_hw, kt, last_valid):
    """Reduction axis tiled.  x_ref: (row_tile, hw_tile); o_ref/acc_ref: (1, row_tile).

    Grid = (row groups [parallel], hw tiles [arbitrary, last]).  `last_valid` is the
    number of valid columns in the final hw tile, or None if hw divides evenly.
    """
    k = pl.program_id(1)

    @pl.when(k == 0)
    def _():
        acc_ref[...] = jnp.zeros_like(acc_ref)

    x = x_ref[...].astype(jnp.float32)

    if last_valid is None:
        acc_ref[...] += jnp.sum(x[None], axis=-1)
    else:
        # Mask only on the final (ragged) step; all other steps use the cheap path.
        @pl.when(k < kt - 1)
        def _():
            acc_ref[...] += jnp.sum(x[None], axis=-1)

        @pl.when(k == kt - 1)
        def _():
            col = lax.broadcasted_iota(jnp.int32, x.shape, dimension=1)
            xm = jnp.where(col < last_valid, x, 0.0)
            acc_ref[...] += jnp.sum(xm[None], axis=-1)

    @pl.when(k == kt - 1)
    def _():
        # Exact mean: scale by 1/(H*W) of the full spatial size.
        o_ref[...] = (acc_ref[...] * inv_hw).astype(o_ref.dtype)


def global_avg_pool2d(x, *, vmem_budget_bytes=None):
    """x: (N, C, H, W) -> (N, C); mean over H and W."""
    N, C, H, W = x.shape
    rows, hw = N * C, H * W
    itemsize = x.dtype.itemsize
    x2 = x.reshape(rows, hw)                          # contiguous view, no copy

    # ---- generation-aware VMEM budget ----
    try:
        vmem_cap = int(pltpu.get_tpu_info().vmem_capacity_bytes)
    except Exception:
        vmem_cap = 64 * 1024 * 1024                   # v7x per-core size; safe everywhere
    # Padded bytes allowed per (double-buffered) input pipeline buffer:
    #   v7x (64 MiB VMEM)  -> ~10.7 MiB/buffer;  v5e/v6e (128 MiB) -> 16 MiB/buffer.
    per_buf = min(16 * 1024 * 1024, vmem_cap // 6)
    if vmem_budget_bytes is not None:                 # test hook to force the tiled path
        per_buf = int(vmem_budget_bytes)

    lane_hw = _round_up(hw, _LANE)                    # lanes each row occupies in VMEM

    # ---- tile sizing: bound by padded VMEM bytes AND by real HBM bytes per step ----
    rows_by_vmem = per_buf // (lane_hw * itemsize)
    rows_by_real = max(1, _TARGET_REAL_BYTES // (hw * itemsize))
    row_cap = min(rows_by_vmem, rows_by_real)

    if row_cap >= max(rows, _SUBLANE):
        # Everything fits in one row-group step (sublane padding included).
        row_tile, hw_tile, kt = rows, hw, 1
    elif row_cap >= _LANE:
        # Common case: full H*W per step, stream over 128-aligned row groups.
        row_tile, hw_tile, kt = (row_cap // _LANE) * _LANE, hw, 1
    else:
        # Very large H*W: also tile the reduction axis and accumulate across it.
        row_tile = rows if rows < _LANE else _LANE
        row_pad = _round_up(row_tile, _SUBLANE)
        hw_tile = max(_LANE, (per_buf // (row_pad * itemsize)) // _LANE * _LANE)
        if hw_tile >= hw:
            hw_tile, kt = hw, 1
        else:
            kt = pl.cdiv(hw, hw_tile)
            # Re-balance so the last (masked) tile isn't mostly empty.
            hw_tile = max(_LANE, _round_up(pl.cdiv(hw, kt), _LANE))
            kt = pl.cdiv(hw, hw_tile)

    # v7x megacore: ensure the parallel row-group axis has >= 2 steps when possible so
    # both TensorCores shard it (cost on single-core chips: one extra ~0.35us step).
    if rows >= 2 * _LANE:
        row_tile = min(row_tile, _round_up(pl.cdiv(rows, 2), _LANE))

    gr = pl.cdiv(rows, row_tile)

    # ---- explicit scoped-VMEM limit (covers double-buffered input + output + scratch) ----
    in_buf_bytes = 2 * _round_up(row_tile, _SUBLANE) * _round_up(hw_tile, _LANE) * itemsize
    out_buf_bytes = 2 * _round_up(row_tile, _LANE) * itemsize
    acc_bytes = _round_up(row_tile, _LANE) * 4
    needed = in_buf_bytes + out_buf_bytes + acc_bytes
    vmem_limit = int(min(vmem_cap * 3 // 4,
                         max(32 * 1024 * 1024, needed + 4 * 1024 * 1024)))

    inv_hw = 1.0 / float(hw)
    cost = pl.CostEstimate(
        flops=rows * hw,
        transcendentals=0,
        bytes_accessed=rows * hw * itemsize + rows * itemsize,
    )

    if kt == 1:
        kernel = functools.partial(_gap_kernel_single, inv_hw=inv_hw)
        out = pl.pallas_call(
            kernel,
            out_shape=jax.ShapeDtypeStruct((1, rows), x.dtype),
            grid_spec=pltpu.PrefetchScalarGridSpec(
                num_scalar_prefetch=0,
                grid=(gr,),
                in_specs=[pl.BlockSpec((row_tile, hw), lambda i: (i, 0))],
                out_specs=pl.BlockSpec((1, row_tile), lambda i: (0, i)),
            ),
            compiler_params=pltpu.CompilerParams(
                dimension_semantics=("parallel",),
                vmem_limit_bytes=vmem_limit,
            ),
            cost_estimate=cost,
        )(x2)
    else:
        ragged = (hw % hw_tile) != 0
        last_valid = (hw - (kt - 1) * hw_tile) if ragged else None
        kernel = functools.partial(_gap_kernel_tiled, inv_hw=inv_hw, kt=kt,
                                   last_valid=last_valid)
        out = pl.pallas_call(
            kernel,
            out_shape=jax.ShapeDtypeStruct((1, rows), x.dtype),
            grid_spec=pltpu.PrefetchScalarGridSpec(
                num_scalar_prefetch=0,
                grid=(gr, kt),                        # reduction axis last
                in_specs=[pl.BlockSpec((row_tile, hw_tile), lambda i, k: (i, k))],
                out_specs=pl.BlockSpec((1, row_tile), lambda i, k: (0, i)),
                scratch_shapes=[pltpu.VMEM((1, row_tile), jnp.float32)],
            ),
            compiler_params=pltpu.CompilerParams(
                dimension_semantics=("parallel", "arbitrary"),
                vmem_limit_bytes=vmem_limit,
            ),
            cost_estimate=cost,
        )(x2)

    return out.reshape(N, C)


if __name__ == "__main__":
    key = jax.random.PRNGKey(0)

    # Small NCHW shape consistent with the module.
    N, C, H, W = 2, 4, 16, 16
    x = jax.random.normal(key, (N, C, H, W), dtype=jnp.float32)
    y = jax.block_until_ready(global_avg_pool2d(x))
    y_ref = jnp.mean(x, axis=(2, 3))
    assert y.shape == (N, C), y.shape
    assert jnp.allclose(y, y_ref, atol=1e-5, rtol=1e-5)

    # Multi-row-group path (grid[0] > 1, lane-dense 128-wide output stores).
    x2 = jax.random.normal(jax.random.PRNGKey(0), (4, 64, 8, 8), dtype=jnp.float32)
    y2 = jax.block_until_ready(global_avg_pool2d(x2))
    assert y2.shape == (4, 64), y2.shape
    assert jnp.allclose(y2, jnp.mean(x2, axis=(2, 3)), atol=1e-5, rtol=1e-5)

    # Reduction-tiled path with a ragged (masked) final hw tile, forced via a tiny budget.
    x3 = jax.random.normal(jax.random.PRNGKey(0), (1, 2, 100, 100), dtype=jnp.float32)
    y3 = jax.block_until_ready(global_avg_pool2d(x3, vmem_budget_bytes=4096))
    assert y3.shape == (1, 2), y3.shape
    assert jnp.allclose(y3, jnp.mean(x3, axis=(2, 3)), atol=1e-5, rtol=1e-5)

    print("KERNEL_OK")
</pallas_src>

<mosaic_0001>
module attributes {stable_mosaic.version = 11 : i64} {
  func.func @_gap_kernel_single(%arg0: i32, %arg1: memref<8x256xf32, #tpu.memory_space<vmem>>, %arg2: memref<1x8xf32, #tpu.memory_space<vmem>>) attributes {dimension_semantics = [#tpu.dimension_semantics<parallel>], iteration_bounds = array<i64: 1>, scalar_prefetch = 0 : i64, scratch_operands = 0 : i64, tpu.core_type = #tpu.core_type<tc>, window_params = [{transform_indices = @transform_0, window_bounds = array<i64: 8, 256>}, {transform_indices = @transform_1, window_bounds = array<i64: 1, 8>}]} {
    %c0 = arith.constant 0 : index
    %c0_0 = arith.constant 0 : index
    %0 = vector.load %arg1[%c0, %c0_0] : memref<8x256xf32, #tpu.memory_space<vmem>>, vector<8x256xf32>
    %1 = vector.shape_cast %0 : vector<8x256xf32> to vector<1x8x256xf32>
    %cst = arith.constant dense<0.000000e+00> : vector<1x8xf32>
    %2 = vector.multi_reduction <add>, %1, %cst [2] : vector<1x8x256xf32> to vector<1x8xf32>
    %cst_1 = arith.constant 3.906250e-03 : f32
    %3 = vector.broadcast %cst_1 : f32 to vector<1x8xf32>
    %4 = arith.mulf %2, %3 : vector<1x8xf32>
    %c0_2 = arith.constant 0 : index
    %c0_3 = arith.constant 0 : index
    %5 = vector.load %arg2[%c0_2, %c0_3] : memref<1x8xf32, #tpu.memory_space<vmem>>, vector<1x8xf32>
    tpu.vector_store %arg2[%c0_2, %c0_3], %4 {strides = array<i32>} : memref<1x8xf32, #tpu.memory_space<vmem>>, vector<1x8xf32>,
    return
  }
  func.func @transform_0(%arg0: i32) -> (i32, i32) {
    %c0_i32 = arith.constant 0 : i32
    %c0_i32_0 = arith.constant 0 : i32
    return %arg0, %c0_i32 : i32, i32
  }
  func.func @transform_1(%arg0: i32) -> (i32, i32) {
    %c0_i32 = arith.constant 0 : i32
    %c0_i32_0 = arith.constant 0 : i32
    return %c0_i32, %arg0 : i32, i32
  }
}

</mosaic_0001>

<bundles_post_ra>
// kernel: tpu_custom_call.1
= control target key start
LH: loop header
LB: loop body
LE: loop exit
PB: predicated region body
PF: predicated region fallthrough
CT: control target
= control target key end

     0   :  { %6 = vsyncpa [#allocation3], 0  ;;  %s125_s0 = inlined_call_operand.hbm [shape: f32[8,256], index: 0, kind: input, shape index: {}]   ;;  %s126_s1 = inlined_call_operand.hbm [shape: f32[1,8], index: 1, kind: output, shape index: {}]  }
   0x1   :  { %7 = vsyncpa [#allocation4], 0  ;;  %s13_s8 = sshll.u32 %s125_s0, 4  ;;  %s107_s9 = smov [#allocation2]   ;;  %s14_s8 = int_to_ptr.hbm [resolvable:$true] %s13_s8 }
   0x2   :  { %s15_s10 = sshll.u32 %s107_s9, 4  ;;  %s16_s10 = int_to_ptr.vmem [resolvable:$true] %s15_s10 }
   0x3   :  { %18 = dma.hbm_to_vmem [thread:$0]  %s14_s8, 256, %s16_s10, [#allocation3]  }
   0x4   :  { %103 = dma.done.wait [#allocation3], 256  }
   0x5   :  { %104 = vsyncadd [#allocation3], 4294967040  ;;  %v23_v0 = vld [vmem:[#allocation2] sm:$0xff]  ;;  %v24_v1 = vld [vmem:[#allocation2 + $0x8] sm:$0xff]  ;;  %v30_v3 = vlaneseq  ;;  %s108_s11 = smov [#allocation5]   ;;  %s43_s0 = sshll.u32 %s126_s1, 4  ;;  %s44_s0 = int_to_ptr.hbm [resolvable:$true] %s43_s0 }
   0x6   :  { %v25_v2 = vadd.f32 %v24_v1, %v23_v0  ;;  %s41_s12 = sshll.u32 %s108_s11, 4  ;;  %vm34_vm0 = vcmask 57344   ;;  %s42_s12 = int_to_ptr.vmem [resolvable:$true] %s41_s12 }
   0x7   :  { %v31_v4 = vand.u32 127, %v30_v3 }
   0x8   :  { %26 = vadd.xlane.f32.xlu0 %v25_v2 }
  0x7b   :  { %v27_v5 = vpop.xlane.xlu0 %26 }
  0x7c   :  { %v28_v6 = vmul.f32 0.00390625, %v27_v5 }
  0x7e   :  { %v32_v7 = vperm.slane %v28_v6, %v31_v4 }
  0x80   :  { %35 = vst.msk [vmem:[#allocation5] sm:$0x1] %vm34_vm0, %v32_v7 }
  0x81   :  { %46 = dma.vmem_to_hbm [thread:$0]  %s42_s12, 16, %s44_s0, [#allocation4]  }
  0x82   :  { %105 = dma.done.wait [#allocation4], 16  }
  0x83   :  { %106 = vsyncadd [#allocation4], 4294967280 }
  0x84   :  { %51 = vsyncpa [#allocation3], 1 }
  0x85   :  { %52 = vsyncpa [#allocation4], 1 }

</bundles_post_ra>
